<compile_context>
chip_gen: v7x
topology: tpu7x:2x2x1
jax: 0.10.0
libtpu: 0.0.40
codegen_flags: <defaults>
</compile_context>

<pallas_src>
from functools import partial

import jax
import jax.numpy as jnp
from jax.experimental import pallas as pl
from jax.experimental.pallas import tpu as pltpu


def _envelope_kernel(x_ref, o_ref, *, p, a, b, c):
    # Compute in f32 regardless of storage dtype (v5e has no bf16 VPU/EUP path).
    x = x_ref[...].astype(jnp.float32)
    # Static integer power -> repeated multiplies on the VPU (no transcendentals).
    x_pm1 = x ** (p - 1)
    # Horner form of a*x^(p-1) + b*x^p + c*x^(p+1) = x^(p-1) * (a + x*(b + c*x)).
    env = 1.0 / x + x_pm1 * (a + x * (b + c * x))
    o_ref[...] = jnp.where(x < 1.0, env, 0.0).astype(o_ref.dtype)


def _round_up(x, m):
    return ((x + m - 1) // m) * m


def _choose_tile_rows(rows, *, lanes, itemsize, sublane):
    """Pick a row-block size: big enough to amortize per-step overhead (~1 MiB
    blocks), small enough to keep >=2 grid programs (v7x megacore sharding) and
    to avoid padding small inputs up to a whole huge tile."""
    target_bytes = 1 << 20  # ~1 MiB per block per buffer; trivially fits VMEM
    tr = max(sublane, min(2048, target_bytes // (lanes * itemsize)))
    tr = _round_up(tr, sublane)
    # Keep at least 2 grid programs when there is enough work.
    while tr > sublane and rows < 2 * tr:
        tr //= 2
    tr = max(_round_up(tr, sublane), sublane)
    # Never pad a small/ragged input beyond its own sublane-rounded row count.
    tr = min(tr, _round_up(rows, sublane))
    return tr


def envelope(inputs, exponent, *, min_pallas_elems=2048):
    """Applies the DimeNet envelope elementwise. Matches torch semantics."""
    p = exponent + 1
    a = -(p + 1) * (p + 2) / 2.0
    b = float(p * (p + 2))
    c = -p * (p + 1) / 2.0

    orig_shape = inputs.shape
    n = inputs.size
    if n == 0:
        return inputs

    # Tiny inputs (e.g. a few hundred edges): pad/reshape/dispatch overhead
    # dwarfs the work — let XLA fuse the elementwise expression directly.
    if n < min_pallas_elems:
        return envelope_ref(inputs, exponent)

    lanes = 128
    itemsize = jnp.dtype(inputs.dtype).itemsize
    sublane = {4: 8, 2: 16, 1: 32}.get(itemsize, 8)

    flat = inputs.reshape(-1)
    rows = pl.cdiv(n, lanes)
    tile_rows = _choose_tile_rows(rows, lanes=lanes, itemsize=itemsize,
                                  sublane=sublane)
    rows_pad = _round_up(rows, tile_rows)
    n_pad = rows_pad * lanes

    # Single pad pass, skipped entirely when the size is already block-aligned.
    # Pad value 2.0 (>= 1) so the where() inside the kernel zeroes it out.
    if n_pad != n:
        flat = jnp.pad(flat, (0, n_pad - n), constant_values=2.0)
    x2d = flat.reshape(rows_pad, lanes)

    grid = (rows_pad // tile_rows,)
    out2d = pl.pallas_call(
        partial(_envelope_kernel, p=p, a=a, b=b, c=c),
        out_shape=jax.ShapeDtypeStruct((rows_pad, lanes), inputs.dtype),
        grid_spec=pltpu.PrefetchScalarGridSpec(
            num_scalar_prefetch=0,
            grid=grid,
            in_specs=[pl.BlockSpec((tile_rows, lanes), lambda i: (i, 0))],
            out_specs=pl.BlockSpec((tile_rows, lanes), lambda i: (i, 0)),
        ),
        compiler_params=pltpu.CompilerParams(
            dimension_semantics=("parallel",)),
    )(x2d)

    out = out2d.reshape(-1)
    if n_pad != n:
        out = out[:n]
    return out.reshape(orig_shape)


def envelope_ref(inputs, exponent):
    """Plain-JAX reference mirroring the PyTorch forward exactly."""
    p = exponent + 1
    a = -(p + 1) * (p + 2) / 2.0
    b = float(p * (p + 2))
    c = -p * (p + 1) / 2.0
    env_val = (1.0 / inputs + a * inputs ** (p - 1) + b * inputs ** p
               + c * inputs ** (p + 1))
    return jnp.where(inputs < 1.0, env_val, jnp.zeros_like(inputs))


if __name__ == "__main__":
    exponent = 5  # typical DimeNet setting

    # Pallas-path test: enough edges that the kernel path is taken
    # (4096 elems -> 32 rows of 128 lanes, no padding, grid of 2 programs).
    key = jax.random.PRNGKey(0)
    num_edges = 4096
    x = jax.random.uniform(key, (num_edges, 1), dtype=jnp.float32,
                           minval=0.05, maxval=1.5)
    out = jax.block_until_ready(envelope(x, exponent))
    ref = envelope_ref(x, exponent)
    assert out.shape == x.shape and out.dtype == x.dtype
    assert jnp.allclose(out, ref, rtol=1e-5, atol=1e-5), "mismatch vs reference"

    # Small-input fast path (typical DimeNet edge count, shape (num_edges, 1)).
    x_small = jax.random.uniform(jax.random.PRNGKey(1), (300, 1),
                                 dtype=jnp.float32, minval=0.05, maxval=1.5)
    out_small = jax.block_until_ready(envelope(x_small, exponent))
    assert out_small.shape == x_small.shape and out_small.dtype == x_small.dtype
    assert jnp.allclose(out_small, envelope_ref(x_small, exponent),
                        rtol=1e-5, atol=1e-5), "fast-path mismatch vs reference"

    print("KERNEL_OK")
</pallas_src>

<mosaic_0001>
module attributes {stable_mosaic.version = 11 : i64} {
  func.func @_envelope_kernel(%arg0: i32, %arg1: memref<16x128xf32, #tpu.memory_space<vmem>>, %arg2: memref<16x128xf32, #tpu.memory_space<vmem>>) attributes {dimension_semantics = [#tpu.dimension_semantics<parallel>], iteration_bounds = array<i64: 2>, scalar_prefetch = 0 : i64, scratch_operands = 0 : i64, tpu.core_type = #tpu.core_type<tc>, window_params = [{transform_indices = @transform_0, window_bounds = array<i64: 16, 128>}, {transform_indices = @transform_1, window_bounds = array<i64: 16, 128>}]} {
    %c0 = arith.constant 0 : index
    %c0_0 = arith.constant 0 : index
    %0 = vector.load %arg1[%c0, %c0_0] : memref<16x128xf32, #tpu.memory_space<vmem>>, vector<16x128xf32>
    %1 = arith.mulf %0, %0 : vector<16x128xf32>
    %2 = arith.mulf %1, %1 : vector<16x128xf32>
    %3 = arith.mulf %0, %2 : vector<16x128xf32>
    %cst = arith.constant 1.000000e+00 : f32
    %4 = vector.broadcast %cst : f32 to vector<16x128xf32>
    %5 = arith.divf %4, %0 : vector<16x128xf32>
    %cst_1 = arith.constant -2.100000e+01 : f32
    %6 = vector.broadcast %cst_1 : f32 to vector<16x128xf32>
    %7 = arith.mulf %6, %0 : vector<16x128xf32>
    %cst_2 = arith.constant 4.800000e+01 : f32
    %8 = vector.broadcast %cst_2 : f32 to vector<16x128xf32>
    %9 = arith.addf %8, %7 : vector<16x128xf32>
    %10 = arith.mulf %0, %9 : vector<16x128xf32>
    %cst_3 = arith.constant -2.800000e+01 : f32
    %11 = vector.broadcast %cst_3 : f32 to vector<16x128xf32>
    %12 = arith.addf %11, %10 : vector<16x128xf32>
    %13 = arith.mulf %3, %12 : vector<16x128xf32>
    %14 = arith.addf %5, %13 : vector<16x128xf32>
    %cst_4 = arith.constant 1.000000e+00 : f32
    %15 = vector.broadcast %cst_4 : f32 to vector<16x128xf32>
    %16 = arith.cmpf olt, %0, %15 : vector<16x128xf32>
    %cst_5 = arith.constant 0.000000e+00 : f32
    %17 = vector.broadcast %cst_5 : f32 to vector<16x128xf32>
    %18 = arith.select %16, %14, %17 : vector<16x128xi1>, vector<16x128xf32>
    %c0_6 = arith.constant 0 : index
    %c0_7 = arith.constant 0 : index
    %19 = vector.load %arg2[%c0_6, %c0_7] : memref<16x128xf32, #tpu.memory_space<vmem>>, vector<16x128xf32>
    tpu.vector_store %arg2[%c0_6, %c0_7], %18 {strides = array<i32>} : memref<16x128xf32, #tpu.memory_space<vmem>>, vector<16x128xf32>,
    return
  }
  func.func @transform_0(%arg0: i32) -> (i32, i32) {
    %c0_i32 = arith.constant 0 : i32
    %c0_i32_0 = arith.constant 0 : i32
    return %arg0, %c0_i32 : i32, i32
  }
  func.func @transform_1(%arg0: i32) -> (i32, i32) {
    %c0_i32 = arith.constant 0 : i32
    %c0_i32_0 = arith.constant 0 : i32
    return %arg0, %c0_i32 : i32, i32
  }
}

</mosaic_0001>

<bundles_post_ra>
// kernel: tpu_custom_call.1
= control target key start
LH: loop header
LB: loop body
LE: loop exit
PB: predicated region body
PF: predicated region fallthrough
CT: control target
= control target key end

     0   :  { %6 = vsyncpa [#allocation3], 0  ;;  %s600_s0 = inlined_call_operand.hbm [shape: f32[32,128], index: 0, kind: input, shape index: {}]   ;;  %s601_s1 = inlined_call_operand.hbm [shape: f32[32,128], index: 1, kind: output, shape index: {}]  }
   0x1   :  { %8 = vsyncpa [#allocation3 + $0x1], 0 }
   0x2   :  { %9 = vsyncpa [#allocation4], 0 }
   0x3   :  { %11 = vsyncpa [#allocation4 + $0x1], 0  ;;  %s438_s6 = smov 0   ;;  %s440_s7 = smov 0  }
   0x4   :  { %s442_s8 = smov 0   ;;  %s444_s9 = smov 0  }
   0x5 LB: > { %s459_s10 = sadd.s32 4294967295, %s420_s9   ;;  %s254_s11 = sadd.s32 4294967294, %s420_s9   ;;  %s420_s9 = sphi %s444_s9, %s614_s9   ;;  %s416_s8 = sphi %s442_s8, %s613_s8   ;;  %s412_s7 = sphi %s440_s7, %s612_s7   ;;  %s408_s6 = sphi %s438_s6, %s611_s6  }
   0x6   : > { %s463_s12 = sadd.s32 1, %s420_s9   ;;  %s24_s13 = sadd.s32 1, %s416_s8 }
   0x7   : > { %s21_s14 = ssub.s32 %s420_s9, %s463_s12  ;;  %p31_p0 = scmp.ne.s32.totalorder %s416_s8, %s412_s7 }
   0x8   : > { %p22_p1 = scmp.eq.s32.totalorder %s21_s14, 0  ;;  %p32_p2 = scmp.eq.s32.totalorder %s420_s9, 0 }
   0x9   : > { %p37_p3 = scmp.ne.s32.totalorder %s412_s7, %s408_s6  ;;  %p38_p4 = scmp.eq.s32.totalorder %s459_s10, 0 }
   0xa   : > { %s475_s15 = scalar_select %p22_p1, %s416_s8, %s24_s13  }
   0xb   : > { %p477_p5 = por %p32_p2, %p31_p0  ;;  %p481_p6 = por %p38_p4, %p37_p3 }
   0xc   : > { %p61_p7 = scmp.eq.s32.totalorder %s459_s10, 1  ;;  %p67_p8 = scmp.eq.s32.totalorder %s254_s11, 1 }
   0xd   : > { %p282_p10 = scmp.lt.s32.totalorder %s420_s9, 2  ;;  %s87_s20 = sand.u32 1, %s416_s8  }
   0xe   : > { %p488_p11 = por %p61_p7, %p31_p0  ;;  %p492_p12 = por %p67_p8, %p37_p3 }
   0xf   : > { %s268_s21 = sshll.u32 %s420_s9, 8  ;;  %s257_s22 = sshll.u32 %s87_s20, 4 }
  0x10   : > { %s605_s18 = scalar_select %p488_p11, 1, 0 }
  0x11   : > { %s606_s19 = scalar_select %p492_p12, 1, 0 }
  0x12   : > { %s501_s25 = scalar_lea.hbm %s600_s0, %s268_s21  ;;  %s91_s26 = scalar_lea.vmem [#allocation2], %s257_s22 }
  0x13   : > { %s98_s27 = sshll.u32 %s91_s26, 4  ;;  %p505_p13 = pnand %p282_p10, %p477_p5  ;;  %s509_s27 = int_to_ptr.vmem [resolvable:$true] %s98_s27 }
  0x14   : > { %s511_s29 = scalar_lea.sflag [#allocation3], %s87_s20  ;;  %s324_s30 = scalar_lea.hbm %s501_s25, 256 }
  0x15   : > { %p325_p0 = scmp.ne.s32.totalorder %s501_s25, %s324_s30  ;;  %p326_p1 = pneg %p505_p13 }
  0x16   : > { %s329_s4 = scalar_lea.hbm %s600_s0, 512  ;;  %p330_p4 = scmp.lt.u32.totalorder %s501_s25, %s600_s0 }
  0x17   : > { %p327_p2 = pnand %p326_p1, %p325_p0  ;;  %p331_p5 = scmp.lt.u32.totalorder %s329_s4, %s324_s30 }
  0x18   : > { %p333_p8 = scmp.lt.u32.totalorder %s324_s30, %s501_s25 }
  0x19   : > { %p328_p3 = pneg %p327_p2  ;;  %p332_p7 = por %p331_p5, %p330_p4 }
  0x1b   : > { %p334_p10 = por %p333_p8, %p332_p7 }
  0x1d   : > { %p335_p9 = pnand %p334_p10, %p328_p3 }
  0x1f   : > { %338 = shalt.err (!%p335_p9)
}
  0x20   : > { %s339_s13 = scalar_lea.vmem %s509_s27, 256  ;;  %s422_s14 = smov [#allocation2]  }
  0x21   : > { %p340_p0 = scmp.ne.s32.totalorder %s509_s27, %s339_s13  ;;  %s344_s16 = sshll.u32 %s422_s14, 4  ;;  %s345_s16 = int_to_ptr.vmem [resolvable:$false] %s344_s16 }
  0x22   : > { %s346_s20 = scalar_lea.vmem %s345_s16, 512  ;;  %p347_p11 = scmp.lt.s32.totalorder %s509_s27, %s345_s16 }
  0x23   : > { %p342_p2 = pnand %p340_p0, %p326_p1  ;;  %p348_p4 = scmp.lt.s32.totalorder %s346_s20, %s339_s13 }
  0x25   : > { %p343_p12 = pneg %p342_p2  ;;  %p349_p5 = por %p348_p4, %p347_p11 }
  0x27   : > { %p350_p7 = pnand %p349_p5, %p343_p12 }
  0x29   : > { %353 = shalt.err (!%p350_p7)
}
  0x2a   : > { %s423_s21 = smov 128   ;;  %s424_s22 = smov 8  }
  0x2b   : > { %277 = dma.hbm_to_vmem [thread:$0]  (!%p505_p13), %s501_s25, 256, %s509_s27, %s511_s29, %s423_s21, %s423_s21, %s424_s22  }
  0x2c   : > { %p260_p9 = scmp.ge.s32.totalorder %s420_s9, 1  ;;  %p106_p1 = scmp.lt.s32.totalorder %s420_s9, 3 }
  0x2e   : > { %p107_p3 = pnand %p260_p9, %p106_p1 }
  0x2f   : > { %s542_s23 = sand.u32 (!%p107_p3), 1, %s412_s7  }
  0x30   : > { %110 = sbr.rel (%p107_p3) target bundleno = 87 (0x57), region = 24  ;;  %s261_s24 = sshll.u32 (!%p107_p3), %s542_s23, 4 }
  0x31   : > { %s113_s26 = scalar_lea.sflag (!%p107_p3), [#allocation3], %s542_s23  ;;  %s116_s30 = scalar_lea.vmem (!%p107_p3), [#allocation2], %s261_s24 }
  0x37   : > { %399 = dma.done.wait (%p481_p6), %s113_s26, 256  }
  0x38   : > { %401 = vsyncadd (%p481_p6), %s113_s26, 4294967040  ;;  %v137_v0 = vld [vmem:[%s116_s30] sm:$0xff]  ;;  %v138_v1 = vld [vmem:[%s116_s30 + $0x8] sm:$0xff]  ;;  %s134_s17 = scalar_lea.vmem [#allocation5], %s261_s24  ;;  %s269_s27 = sshll.u32 %s459_s10, 8 }
  0x39   : > { %v139_v2 = vmul.f32 %v137_v0, %v137_v0  ;;  %320 = vrcp.f32 %v137_v0  ;;  %v149_v3 = vmul.f32 -21.0, %v137_v0  ;;  %v140_v4 = vmul.f32 %v138_v1, %v138_v1  ;;  %s181_s25 = sshll.u32 %s134_s17, 4  ;;  %s556_s2 = scalar_lea.hbm %s601_s1, %s269_s27  ;;  %s551_s25 = int_to_ptr.vmem [resolvable:$true] %s181_s25 }
  0x3a   : > { %322 = vrcp.f32 %v138_v1  ;;  %v150_v5 = vmul.f32 -21.0, %v138_v1  ;;  %vm161_vm0 = vcmp.lt.f32.partialorder %v137_v0, 1.0  ;;  %vm162_vm1 = vcmp.lt.f32.partialorder %v138_v1, 1.0  ;;  %s168_s10 = scalar_lea.sflag [#allocation4], %s542_s23  ;;  %s354_s3 = scalar_lea.vmem %s551_s25, 256 }
  0x3b   : > { %v141_v6 = vmul.f32 %v139_v2, %v139_v2  ;;  %v151_v7 = vadd.f32 48.0, %v149_v3  ;;  %v142_v8 = vmul.f32 %v140_v4, %v140_v4  ;;  %p355_p6 = scmp.ne.s32.totalorder %s551_s25, %s354_s3  ;;  %p608_p11 = scmp.ne.s32.totalorder %s605_s18, 0 }
  0x3c   : > { %v152_v9 = vadd.f32 48.0, %v150_v5  ;;  %s425_s4 = smov [#allocation5]  }
  0x3d   : > { %v143_v10 = vmul.f32 %v141_v6, %v137_v0  ;;  %v153_v11 = vmul.f32 %v151_v7, %v137_v0  ;;  %v144_v12 = vmul.f32 %v142_v8, %v138_v1  ;;  %p356_p12 = pnand %p355_p6, %p608_p11  ;;  %s358_s5 = sshll.u32 %s425_s4, 4  ;;  %s359_s5 = int_to_ptr.vmem [resolvable:$false] %s358_s5 }
  0x3e   : > { %v154_v13 = vmul.f32 %v152_v9, %v138_v1  ;;  %s360_s11 = scalar_lea.vmem %s359_s5, 512  ;;  %p361_p8 = scmp.lt.s32.totalorder %s551_s25, %s359_s5 }
  0x3f   : > { %v155_v14 = vadd.f32 -28.0, %v153_v11  ;;  %p357_p13 = pneg %p356_p12  ;;  %p362_p10 = scmp.lt.s32.totalorder %s360_s11, %s354_s3 }
  0x40   : > { %v156_v15 = vadd.f32 -28.0, %v154_v13 }
  0x41   : > { %v157_v16 = vmul.f32 %v155_v14, %v143_v10  ;;  %p363_p0 = por %p362_p10, %p361_p8 }
  0x42   : > { %v158_v17 = vmul.f32 %v156_v15, %v144_v12 }
  0x43   : > { %v321_v18 = vpop.eup %320  ;;  %p364_p2 = pnand %p363_p0, %p357_p13 }
  0x44   : > { %v323_v19 = vpop.eup %322  ;;  %v159_v20 = vadd.f32 %v321_v18, %v157_v16 }
  0x45   : > { %v160_v21 = vadd.f32 %v323_v19, %v158_v17 }
  0x46   : > { %v163_v22 = vsel %vm161_vm0, %v159_v20, 0.0 }
  0x47   : > { %165 = vst [vmem:[%s134_s17] sm:$0xff] %v163_v22  ;;  %v164_v23 = vsel %vm162_vm1, %v160_v21, 0.0 }
  0x48   : > { %166 = vst [vmem:[%s134_s17 + $0x8] sm:$0xff] %v164_v23 }
  0x49   : > { %367 = shalt.err (!%p364_p2)
}
  0x4a   : > { %s368_s13 = scalar_lea.hbm %s556_s2, 256  ;;  %s372_s20 = scalar_lea.hbm %s601_s1, 512 }
  0x4b   : > { %p369_p4 = scmp.ne.s32.totalorder %s556_s2, %s368_s13  ;;  %p373_p9 = scmp.lt.u32.totalorder %s556_s2, %s601_s1 }
  0x4c   : > { %p374_p1 = scmp.lt.u32.totalorder %s372_s20, %s368_s13  ;;  %p376_p6 = scmp.lt.u32.totalorder %s368_s13, %s556_s2 }
  0x4d   : > { %p370_p5 = pnand %p369_p4, %p608_p11 }
  0x4e   : > { %p375_p3 = por %p374_p1, %p373_p9 }
  0x4f   : > { %p371_p7 = pneg %p370_p5 }
  0x50   : > { %p377_p12 = por %p376_p6, %p375_p3 }
  0x52   : > { %p378_p13 = pnand %p377_p12, %p371_p7 }
  0x54   : > { %381 = shalt.err (!%p378_p13)
}
  0x55   : > { %s426_s24 = smov 128   ;;  %s427_s26 = smov 8  }
  0x56   : > { %272 = dma.vmem_to_hbm [thread:$0]  (%p608_p11), %s551_s25, 256, %s556_s2, %s168_s10, %s426_s24, %s426_s24, %s427_s26  }
  0x57 PF: > { %s196_s30 = sand.u32 1, %s408_s6   ;;  %p609_p8 = scmp.ne.s32.totalorder %s606_s19, 0 }
  0x58   : > { %p610_p10 = scmp.ge.s32.totalorder %s420_s9, 2  ;;  %s197_s17 = scalar_lea.sflag [#allocation4], %s196_s30 }
  0x5a   : > { %p279_p0 = pnand %p610_p10, %p609_p8 }
  0x5c   : > { %403 = dma.done.wait (!%p279_p0), %s197_s17, 256  }
  0x5d   : > { %405 = vsyncadd (!%p279_p0), %s197_s17, 4294967040  ;;  %p14_p2 = scmp.ge.s32.totalorder %s463_s12, 4   ;;  %s611_s6 = smov %s412_s7 }
  0x5e   : > { %s612_s7 = smov %s416_s8  ;;  %s613_s8 = smov %s475_s15 }
  0x5f   : > { %s614_s9 = smov %s463_s12  ;;  %16 = sbr.rel (!%p14_p2) target bundleno = 5 (0x5), region = 69 }
  0x66   :  { %202 = vsyncpa [#allocation3], 1 }
  0x67   :  { %204 = vsyncpa [#allocation3 + $0x1], 1 }
  0x68   :  { %205 = vsyncpa [#allocation4], 1 }
  0x69   :  { %207 = vsyncpa [#allocation4 + $0x1], 1 }

</bundles_post_ra>
